<compile_context>
chip_gen: v7x
topology: tpu7x:2x2x1
jax: 0.10.0
libtpu: 0.0.40
codegen_flags: <defaults>
</compile_context>

<pallas_src>
import math
from functools import partial

import jax
import jax.numpy as jnp
import numpy as np
from jax.experimental import pallas as pl
from jax.experimental.pallas import tpu as pltpu

_MAX_DIMS = 8      # dims live on sublanes (power of 2; 8 = one sublane group)
_LANE = 128        # parameters live on lanes; pad P up to a multiple of 128

assert _MAX_DIMS & (_MAX_DIMS - 1) == 0, "_MAX_DIMS must be a power of two"


def _param_count_kernel(sizes_ref, out_ref):
    # sizes_ref: [8, P] int32, whole array resident in VMEM (dims on sublanes,
    # parameters on lanes). P is a multiple of 128 -> fully lane-dense.
    s = sizes_ref[...]
    # Product over the 8 dim rows as a log2 tree: 3 full-width int32 VPU
    # multiplies (8 -> 4 -> 2 -> 1 rows) instead of 7 sublane-slice multiplies.
    prod = s
    half = prod.shape[0] // 2
    while half >= 1:
        prod = prod[:half, :] * prod[half:2 * half, :]
        half //= 2
    # prod: [1, P]. Single XLU lane reduce -> scalar written to SMEM (no
    # masked vst of a nearly-empty vreg, no padded-tile HBM writeback).
    # NOTE: int32 accumulation; wraps past 2^31-1 (host path is exact).
    out_ref[0, 0] = jnp.sum(prod)


def pallas_param_count(size_table: jnp.ndarray) -> jnp.ndarray:
    """sum over lanes of (prod over sublanes) of size_table ([8, P] int32)."""
    # No grid: the table is a handful of vregs; a 1-point grid would add
    # ~600 cycles of pipelining bookkeeping with zero overlap to win.
    return pl.pallas_call(
        _param_count_kernel,
        out_shape=jax.ShapeDtypeStruct((1, 1), jnp.int32),
        in_specs=[pl.BlockSpec(memory_space=pltpu.MemorySpace.VMEM)],
        out_specs=pl.BlockSpec(memory_space=pltpu.MemorySpace.SMEM),
    )(size_table)


# Compile once per table shape; repeated device-path calls hit the executable
# cache instead of re-tracing the pallas_call.
_pallas_param_count_jit = jax.jit(pallas_param_count)


def _folded_dims(shape, max_dims=_MAX_DIMS):
    """Shape as exactly `max_dims` ints: pad with 1, fold extras into last."""
    dims = [int(d) for d in shape]
    if len(dims) > max_dims:
        head, tail = dims[:max_dims - 1], dims[max_dims - 1:]
        dims = head + [int(math.prod(tail))]
    return dims + [1] * (max_dims - len(dims))


def build_size_table(param_shapes):
    """[8, P] int32 table: column j = dims of parameter j (padded with 1 so the
    product is the element count); padding columns are all-zero so they
    contribute 0 to the sum."""
    n = max(len(param_shapes), 1)
    p_padded = ((n + _LANE - 1) // _LANE) * _LANE
    table = np.zeros((_MAX_DIMS, p_padded), dtype=np.int32)
    for j, shp in enumerate(param_shapes):
        table[:, j] = _folded_dims(shp)
    return jnp.asarray(table)


class BaseModelJAX:
    """JAX/Pallas mirror of the PyTorch BaseModel abstract class."""

    def __init__(self, params=()):
        # BaseModel itself registers no parameters; a subclass would.  We keep
        # an optional flat list of parameter arrays so summary() has something
        # to count.
        self.params = list(params)
        self.param_shapes = [tuple(int(d) for d in p.shape) for p in self.params]
        self._nbr_params_cache = None      # host count (exact)
        self._size_table_cache = None      # device-resident [8, P] table
        self._device_count_cache = None    # device scalar result

    def forward(self, *args, **kwargs):
        # TODO(synk): abstract in the reference module; no forward semantics to port.
        raise NotImplementedError

    def nbr_params_host(self) -> int:
        """Trainable-parameter count, computed at trace time on host.

        Shapes are static Python tuples, so this is exact (arbitrary-precision
        Python ints -> no int32 overflow) and costs no kernel dispatch or
        device->host sync.  Cached so repeated summary()/__str__ calls are free.
        """
        if self._nbr_params_cache is None:
            self._nbr_params_cache = sum(math.prod(s) for s in self.param_shapes)
        return self._nbr_params_cache

    def nbr_params_device(self) -> jnp.ndarray:
        """Same reduction on device via the Pallas kernel (int32 demo path).

        The size table is built and transferred to device once per model and
        the pallas_call result is cached, so repeated calls do no H2D copy and
        no kernel dispatch.  Limited to counts < 2^31 (int32); the host path
        used by summary() is exact.
        """
        if self._device_count_cache is None:
            if self._size_table_cache is None:
                self._size_table_cache = build_size_table(self.param_shapes)
            self._device_count_cache = _pallas_param_count_jit(self._size_table_cache)
        return self._device_count_cache

    def summary(self):
        # Host path: exact and free (matches the PyTorch summary() semantics).
        return self.nbr_params_host()

    def __str__(self):
        return f"BaseModelJAX()\nNbr of trainable parameters: {self.summary()}"


if __name__ == "__main__":
    key = jax.random.PRNGKey(0)

    # Deterministic small synthetic parameters that a subclass would own:
    # tiny conv + bias + linear + bias + a 4-D buffer-like parameter.
    shapes = [
        (4, 4, 3, 3),     # conv weight
        (4,),             # conv bias
        (32, 16),         # linear weight
        (32,),            # linear bias
        (2, 4, 16, 16),   # buffer-like parameter
        (8, 8),
        (16,),
        (3, 3),
    ]
    keys = jax.random.split(key, len(shapes))
    params = [jax.random.normal(k, s, dtype=jnp.float32) for k, s in zip(keys, shapes)]
    model = BaseModelJAX(params)

    # Run the Pallas reduction kernel once and block on the result.
    dev_count = jax.block_until_ready(model.nbr_params_device())

    # Reference check (same math as the PyTorch summary()).
    ref = sum(int(np.prod(s)) for s in shapes)
    assert int(dev_count[0, 0]) == ref, (int(dev_count[0, 0]), ref)
    assert model.summary() == ref

    # Second call hits the cache: same device buffer, no rebuild / re-dispatch.
    dev_count2 = model.nbr_params_device()
    assert dev_count2 is dev_count

    # Abstract forward mirrors NotImplementedError.
    try:
        model.forward()
        raise AssertionError("forward() should raise NotImplementedError")
    except NotImplementedError:
        pass

    # No-parameter base case counts to zero (host and device paths).
    empty = BaseModelJAX()
    assert empty.summary() == 0
    empty_dev = jax.block_until_ready(empty.nbr_params_device())
    assert int(empty_dev[0, 0]) == 0

    print("KERNEL_OK")
</pallas_src>

<mosaic_0001>
module attributes {stable_mosaic.version = 11 : i64} {
  func.func @_param_count_kernel(%arg0: memref<8x128xi32, #tpu.memory_space<vmem>>, %arg1: memref<1x1xi32, #tpu.memory_space<smem>>) attributes {dimension_semantics = [], scalar_prefetch = 0 : i64, scratch_operands = 0 : i64, tpu.core_type = #tpu.core_type<tc>} {
    %c0 = arith.constant 0 : index
    %c0_0 = arith.constant 0 : index
    %0 = vector.load %arg0[%c0, %c0_0] : memref<8x128xi32, #tpu.memory_space<vmem>>, vector<8x128xi32>
    %1 = vector.extract_strided_slice %0 {offsets = [0, 0], sizes = [4, 128], strides = [1, 1]} : vector<8x128xi32> to vector<4x128xi32>
    %2 = vector.extract_strided_slice %0 {offsets = [4, 0], sizes = [4, 128], strides = [1, 1]} : vector<8x128xi32> to vector<4x128xi32>
    %3 = arith.muli %1, %2 : vector<4x128xi32>
    %4 = vector.extract_strided_slice %3 {offsets = [0, 0], sizes = [2, 128], strides = [1, 1]} : vector<4x128xi32> to vector<2x128xi32>
    %5 = vector.extract_strided_slice %3 {offsets = [2, 0], sizes = [2, 128], strides = [1, 1]} : vector<4x128xi32> to vector<2x128xi32>
    %6 = arith.muli %4, %5 : vector<2x128xi32>
    %7 = vector.extract_strided_slice %6 {offsets = [0, 0], sizes = [1, 128], strides = [1, 1]} : vector<2x128xi32> to vector<1x128xi32>
    %8 = vector.extract_strided_slice %6 {offsets = [1, 0], sizes = [1, 128], strides = [1, 1]} : vector<2x128xi32> to vector<1x128xi32>
    %9 = arith.muli %7, %8 : vector<1x128xi32>
    %10 = vector.shape_cast %9 : vector<1x128xi32> to vector<1x1x128xi32>
    %cst = arith.constant dense<0> : vector<1xi32>
    %11 = vector.multi_reduction <add>, %10, %cst [1, 2] : vector<1x1x128xi32> to vector<1xi32>
    %12 = vector.shape_cast %11 : vector<1xi32> to vector<1x1x1xi32>
    %13 = vector.extract %12[0, 0, 0] : i32 from vector<1x1x1xi32>
    %c0_1 = arith.constant 0 : index
    %c0_2 = arith.constant 0 : index
    %14 = memref.load %arg1[%c0_1, %c0_2] : memref<1x1xi32, #tpu.memory_space<smem>>
    memref.store %13, %arg1[%c0_1, %c0_2] : memref<1x1xi32, #tpu.memory_space<smem>>
    return
  }
}

</mosaic_0001>

<bundles_post_ra>
// kernel: pallas_param_count.1
= control target key start
LH: loop header
LB: loop body
LE: loop exit
PB: predicated region body
PF: predicated region fallthrough
CT: control target
= control target key end

     0   :  { %6 = vsyncpa [#allocation3], 0  ;;  %s141_s0 = inlined_call_operand.hbm [shape: s32[8,128], index: 0, kind: input, shape index: {}]   ;;  %s142_s1 = inlined_call_operand.hbm [shape: s32[1,1], index: 1, kind: output, shape index: {}]  }
   0x1   :  { %7 = vsyncpa [#allocation4], 0  ;;  %s105_s6 = smov [#allocation2]   ;;  %s69_s10 = scalar_lea.hbm %s141_s0, 128 }
   0x2   :  { %s14_s7 = sshll.u32 %s105_s6, 4  ;;  %p70_p0 = scmp.ne.s32.totalorder %s141_s0, %s69_s10  ;;  %s15_s7 = int_to_ptr.vmem [resolvable:$true] %s14_s7 }
   0x3   :  { %p73_p1 = scmp.lt.u32.totalorder %s69_s10, %s141_s0 }
   0x5   :  { %p75_p2 = pnand %p73_p1, %p70_p0 }
   0x7   :  { %78 = shalt.err (!%p75_p2)
}
   0x8   :  { %s79_s15 = scalar_lea.vmem %s15_s7, 128  ;;  %p84_p4 = scmp.lt.s32.totalorder %s15_s7, %s15_s7 }
   0x9   :  { %p80_p3 = scmp.ne.s32.totalorder %s15_s7, %s79_s15  ;;  %p85_p5 = scmp.lt.s32.totalorder %s79_s15, %s79_s15 }
   0xb   :  { %p86_p6 = por %p85_p5, %p84_p4 }
   0xd   :  { %p87_p7 = pnand %p86_p6, %p80_p3 }
   0xf   :  { %90 = shalt.err (!%p87_p7)
}
  0x10   :  { %17 = dma.hbm_to_vmem [thread:$0]  %s141_s0, 128, %s15_s7, [#allocation3]  }
  0x11   :  { %101 = dma.done.wait [#allocation3], 128  }
  0x12   :  { %102 = vsyncadd [#allocation3], 4294967168  ;;  %v21_v0 = vld [vmem:[#allocation2] sm:$0xff]  ;;  %vm28_vm0 = vcmask 1040384   ;;  %s91_s20 = scalar_lea.hbm %s142_s1, 16 }
  0x13   :  { %v22_v1 = vrot.slane %v21_v0, 4  ;;  %p92_p8 = scmp.ne.s32.totalorder %s142_s1, %s91_s20  ;;  %p95_p9 = scmp.lt.u32.totalorder %s91_s20, %s142_s1 }
  0x15   :  { %v23_v2 = vmul.u32 %v22_v1, %v21_v0  ;;  %p97_p10 = pnand %p95_p9, %p92_p8 }
  0x17   :  { %v24_v3 = vrot.slane %v23_v2, 2 }
  0x19   :  { %v25_v4 = vmul.u32 %v24_v3, %v23_v2 }
  0x1b   :  { %v26_v5 = vrot.slane %v25_v4, 1 }
  0x1d   :  { %v27_v6 = vmul.u32 %v26_v5, %v25_v4 }
  0x1f   :  { %v29_v7 = vsel %vm28_vm0, %v27_v6, 0 }
  0x20   :  { %v31_v8 = vshrl.u32 %v29_v7, 16  ;;  %v30_v9 = vand.u32 65535, %v29_v7 }
  0x22   :  { %v33_v10 = vcvt.s32.f32 %v31_v8  ;;  %v32_v11 = vcvt.s32.f32 %v30_v9 }
  0x24   :  { %36 = vadd.xlane.f32.xlu0 %v33_v10 }
  0x28   :  { %34 = vadd.xlane.f32.xlu0 %v32_v11 }
  0xb1   :  { %v37_v12 = vpop.xlane.xlu0 %36 }
  0xb2   :  { %v39_v13 = vcvt.f32.s32 %v37_v12 }
  0xb4   :  { %v40_v15 = vshll.u32 %v39_v13, 16 }
  0xb5   :  { %v35_v14 = vpop.xlane.xlu0 %34 }
  0xb6   :  { %v38_v16 = vcvt.f32.s32 %v35_v14 }
  0xb8   :  { %v41_v17 = vadd.s32 %v40_v15, %v38_v16 }
  0xba   :  { %v42_v18 = vrot.slane %v41_v17, 4 }
  0xbc   :  { %v43_v19 = vadd.s32 %v42_v18, %v41_v17 }
  0xbe   :  { %v44_v20 = vrot.slane %v43_v19, 2 }
  0xc0   :  { %v45_v21 = vadd.s32 %v44_v20, %v43_v19 }
  0xc2   :  { %v46_v22 = vrot.slane %v45_v21, 1 }
  0xc4   :  { %v47_v23 = vadd.s32 %v46_v22, %v45_v21 }
  0xc6   :  { %65 = vpush %v47_v23 }
  0xf7   :  { %s66_s0 = spop %65 }
  0xf8   :  { %50 = sst [smem:[#allocation5]] %s66_s0 }
  0xf9   :  { %100 = shalt.err (!%p97_p10)
}
  0xfa   :  { %s106_s25 = smov [#allocation5]  }
  0xfb   :  { %58 = dma.smem_to_hbm %s106_s25, 16, %s142_s1, [#allocation4]  }
  0xfc   :  { %103 = dma.done.wait [#allocation4], 16  }
  0xfd   :  { %104 = vsyncadd [#allocation4], 4294967280 }
  0xfe   :  { %62 = sfence }
  0xff   :  { %63 = vsyncpa [#allocation3], 1 }
 0x100   :  { %64 = vsyncpa [#allocation4], 1 }

</bundles_post_ra>
